<compile_context>
chip_gen: v7x
topology: tpu7x:2x2x1
jax: 0.10.0
libtpu: 0.0.40
codegen_flags: <defaults>
</compile_context>

<pallas_src>
import jax
import jax.numpy as jnp
from jax.experimental import pallas as pl
from jax.experimental.pallas import tpu as pltpu


def _round_up(a: int, b: int) -> int:
    return (a + b - 1) // b * b


def ffn_kernel(x_ref, w1_ref, b1_ref, w2_ref, b2_ref, o_ref):
    x = x_ref[...]  # compute dtype (bf16), no explicit upcast

    # input_proj: x @ W1^T + b1   (MXU, f32 accumulation)
    h = jnp.dot(x, w1_ref[...], preferred_element_type=jnp.float32) + b1_ref[...]

    # mish(h) = h * tanh(softplus(h)); single-exp form with large-arg bypass:
    #   t = e^h ; tanh(softplus(h)) = t*(t+2) / (t*(t+2) + 2)
    t = jnp.exp(jnp.minimum(h, 20.0))
    n = t * (t + 2.0)
    m = jnp.where(h > 20.0, h, h * n * pl.reciprocal(n + 2.0, approx=True))

    # out_proj: m @ W2^T + b2   (MXU, f32 accumulation)
    y = jnp.dot(m.astype(x.dtype), w2_ref[...],
                preferred_element_type=jnp.float32) + b2_ref[...]

    # dropout (eval mode) -> identity
    o_ref[...] = y.astype(o_ref.dtype)


def feed_forward(x, w1, b1, w2, b2, *, tile_m=512, compute_dtype=jnp.bfloat16):
    """x: (B, S, H); w1/w2: PyTorch-layout (out, in); b1/b2: (H,)."""
    B, S, H = x.shape
    M = B * S
    out_dtype = x.dtype

    # Effective row tile: at most the (8-rounded) row count, multiple of 8.
    tile_m = max(8, min(tile_m, _round_up(M, 8)))
    M_pad = _round_up(M, tile_m)

    x2d = x.reshape(M, H).astype(compute_dtype)
    if M_pad != M:
        x2d = jnp.pad(x2d, ((0, M_pad - M), (0, 0)))

    w1t = w1.T.astype(compute_dtype)            # (in, out)
    w2t = w2.T.astype(compute_dtype)            # (in, out)
    b1r = b1.reshape(1, H).astype(jnp.float32)
    b2r = b2.reshape(1, H).astype(jnp.float32)

    out = pl.pallas_call(
        ffn_kernel,
        out_shape=jax.ShapeDtypeStruct((M_pad, H), out_dtype),
        grid_spec=pltpu.PrefetchScalarGridSpec(
            num_scalar_prefetch=0,
            grid=(M_pad // tile_m,),
            in_specs=[
                pl.BlockSpec((tile_m, H), lambda i: (i, 0)),   # x rows
                pl.BlockSpec((H, H), lambda i: (0, 0)),        # W1^T (resident)
                pl.BlockSpec((1, H), lambda i: (0, 0)),        # b1
                pl.BlockSpec((H, H), lambda i: (0, 0)),        # W2^T (resident)
                pl.BlockSpec((1, H), lambda i: (0, 0)),        # b2
            ],
            out_specs=pl.BlockSpec((tile_m, H), lambda i: (i, 0)),
        ),
        compiler_params=pltpu.CompilerParams(
            dimension_semantics=("parallel",),
            vmem_limit_bytes=32 * 1024 * 1024,
        ),
    )(x2d, w1t, b1r, w2t, b2r)

    return out[:M].reshape(B, S, H)


def reference(x, w1, b1, w2, b2):
    h = x @ w1.T + b1
    m = h * jnp.tanh(jax.nn.softplus(h))
    return m @ w2.T + b2


if __name__ == "__main__":
    H = 128          # hidden_size (module default; lane-aligned)
    B, S = 2, 8      # small batch / seq

    key = jax.random.PRNGKey(0)
    kx, kw1, kw2, kx2 = jax.random.split(key, 4)

    x = jax.random.normal(kx, (B, S, H), dtype=jnp.float32)
    # init_weights(): normal(0, 0.02) weights, zero biases
    w1 = 0.02 * jax.random.normal(kw1, (H, H), dtype=jnp.float32)
    b1 = jnp.zeros((H,), dtype=jnp.float32)
    w2 = 0.02 * jax.random.normal(kw2, (H, H), dtype=jnp.float32)
    b2 = jnp.zeros((H,), dtype=jnp.float32)

    # Main check (tolerance accounts for bf16 operands + approx reciprocal).
    out = feed_forward(x, w1, b1, w2, b2)
    out = jax.block_until_ready(out)
    ref = reference(x, w1, b1, w2, b2)
    assert out.shape == (B, S, H)
    assert jnp.allclose(out, ref, atol=2e-2, rtol=2e-2), (
        f"mismatch vs reference (max abs err {jnp.max(jnp.abs(out - ref))})")

    # Second check: non-divisible row count -> exercises padding + multi-step grid.
    x2 = jax.random.normal(kx2, (3, 100, H), dtype=jnp.float32)
    out2 = feed_forward(x2, w1, b1, w2, b2, tile_m=128)
    out2 = jax.block_until_ready(out2)
    ref2 = reference(x2, w1, b1, w2, b2)
    assert out2.shape == (3, 100, H)
    assert jnp.allclose(out2, ref2, atol=2e-2, rtol=2e-2), (
        f"mismatch vs reference (padded path), max abs err "
        f"{jnp.max(jnp.abs(out2 - ref2))}")

    print("KERNEL_OK")
</pallas_src>

<mosaic_0001>
module attributes {stable_mosaic.version = 11 : i64} {
  func.func @ffn_kernel(%arg0: i32, %arg1: memref<16x128xbf16, #tpu.memory_space<vmem>>, %arg2: memref<128x128xbf16, #tpu.memory_space<vmem>>, %arg3: memref<1x128xf32, #tpu.memory_space<vmem>>, %arg4: memref<128x128xbf16, #tpu.memory_space<vmem>>, %arg5: memref<1x128xf32, #tpu.memory_space<vmem>>, %arg6: memref<16x128xf32, #tpu.memory_space<vmem>>) attributes {dimension_semantics = [#tpu.dimension_semantics<parallel>], iteration_bounds = array<i64: 1>, scalar_prefetch = 0 : i64, scratch_operands = 0 : i64, tpu.core_type = #tpu.core_type<tc>, window_params = [{transform_indices = @transform_0, window_bounds = array<i64: 16, 128>}, {pipeline_mode = #tpu.pipeline_mode<synchronous>, transform_indices = @transform_1, window_bounds = array<i64: 128, 128>}, {pipeline_mode = #tpu.pipeline_mode<synchronous>, transform_indices = @transform_2, window_bounds = array<i64: 1, 128>}, {pipeline_mode = #tpu.pipeline_mode<synchronous>, transform_indices = @transform_3, window_bounds = array<i64: 128, 128>}, {pipeline_mode = #tpu.pipeline_mode<synchronous>, transform_indices = @transform_4, window_bounds = array<i64: 1, 128>}, {transform_indices = @transform_5, window_bounds = array<i64: 16, 128>}]} {
    %c0 = arith.constant 0 : index
    %c0_0 = arith.constant 0 : index
    %0 = vector.load %arg1[%c0, %c0_0] : memref<16x128xbf16, #tpu.memory_space<vmem>>, vector<16x128xbf16>
    %c0_1 = arith.constant 0 : index
    %c0_2 = arith.constant 0 : index
    %1 = vector.load %arg2[%c0_1, %c0_2] : memref<128x128xbf16, #tpu.memory_space<vmem>>, vector<128x128xbf16>
    %cst = arith.constant dense<0.000000e+00> : vector<16x128xf32>
    %2 = tpu.matmul %0, %1, %cst {dimension_numbers = #tpu.dot_dimension_numbers<[1], [0], [0], [1], [0, 0, 1, 1], [], []>} : vector<16x128xbf16>, vector<128x128xbf16>, vector<16x128xf32> -> vector<16x128xf32>
    %c0_3 = arith.constant 0 : index
    %c0_4 = arith.constant 0 : index
    %3 = vector.load %arg3[%c0_3, %c0_4] : memref<1x128xf32, #tpu.memory_space<vmem>>, vector<1x128xf32>
    %4 = vector.broadcast %3 : vector<1x128xf32> to vector<16x128xf32>
    %5 = arith.addf %2, %4 : vector<16x128xf32>
    %cst_5 = arith.constant 2.000000e+01 : f32
    %6 = vector.broadcast %cst_5 : f32 to vector<16x128xf32>
    %7 = arith.minimumf %5, %6 : vector<16x128xf32>
    %8 = math.exp %7 : vector<16x128xf32>
    %cst_6 = arith.constant 2.000000e+00 : f32
    %9 = vector.broadcast %cst_6 : f32 to vector<16x128xf32>
    %10 = arith.addf %8, %9 : vector<16x128xf32>
    %11 = arith.mulf %8, %10 : vector<16x128xf32>
    %cst_7 = arith.constant 2.000000e+01 : f32
    %12 = vector.broadcast %cst_7 : f32 to vector<16x128xf32>
    %13 = arith.cmpf ogt, %5, %12 : vector<16x128xf32>
    %14 = arith.mulf %5, %11 : vector<16x128xf32>
    %cst_8 = arith.constant 2.000000e+00 : f32
    %15 = vector.broadcast %cst_8 : f32 to vector<16x128xf32>
    %16 = arith.addf %11, %15 : vector<16x128xf32>
    %17 = tpu.reciprocal %16 {approx = true} : vector<16x128xf32> -> vector<16x128xf32>
    %18 = arith.mulf %14, %17 : vector<16x128xf32>
    %19 = arith.select %13, %5, %18 : vector<16x128xi1>, vector<16x128xf32>
    %20 = arith.truncf %19 : vector<16x128xf32> to vector<16x128xbf16>
    %c0_9 = arith.constant 0 : index
    %c0_10 = arith.constant 0 : index
    %21 = vector.load %arg4[%c0_9, %c0_10] : memref<128x128xbf16, #tpu.memory_space<vmem>>, vector<128x128xbf16>
    %cst_11 = arith.constant dense<0.000000e+00> : vector<16x128xf32>
    %22 = tpu.matmul %20, %21, %cst_11 {dimension_numbers = #tpu.dot_dimension_numbers<[1], [0], [0], [1], [0, 0, 1, 1], [], []>} : vector<16x128xbf16>, vector<128x128xbf16>, vector<16x128xf32> -> vector<16x128xf32>
    %c0_12 = arith.constant 0 : index
    %c0_13 = arith.constant 0 : index
    %23 = vector.load %arg5[%c0_12, %c0_13] : memref<1x128xf32, #tpu.memory_space<vmem>>, vector<1x128xf32>
    %24 = vector.broadcast %23 : vector<1x128xf32> to vector<16x128xf32>
    %25 = arith.addf %22, %24 : vector<16x128xf32>
    %c0_14 = arith.constant 0 : index
    %c0_15 = arith.constant 0 : index
    %26 = vector.load %arg6[%c0_14, %c0_15] : memref<16x128xf32, #tpu.memory_space<vmem>>, vector<16x128xf32>
    tpu.vector_store %arg6[%c0_14, %c0_15], %25 {strides = array<i32>} : memref<16x128xf32, #tpu.memory_space<vmem>>, vector<16x128xf32>,
    return
  }
  func.func @transform_0(%arg0: i32) -> (i32, i32) {
    %c0_i32 = arith.constant 0 : i32
    %c0_i32_0 = arith.constant 0 : i32
    return %arg0, %c0_i32 : i32, i32
  }
  func.func @transform_1(%arg0: i32) -> (i32, i32) {
    %c0_i32 = arith.constant 0 : i32
    %c0_i32_0 = arith.constant 0 : i32
    %c0_i32_1 = arith.constant 0 : i32
    return %c0_i32, %c0_i32_0 : i32, i32
  }
  func.func @transform_2(%arg0: i32) -> (i32, i32) {
    %c0_i32 = arith.constant 0 : i32
    %c0_i32_0 = arith.constant 0 : i32
    %c0_i32_1 = arith.constant 0 : i32
    return %c0_i32, %c0_i32_0 : i32, i32
  }
  func.func @transform_3(%arg0: i32) -> (i32, i32) {
    %c0_i32 = arith.constant 0 : i32
    %c0_i32_0 = arith.constant 0 : i32
    %c0_i32_1 = arith.constant 0 : i32
    return %c0_i32, %c0_i32_0 : i32, i32
  }
  func.func @transform_4(%arg0: i32) -> (i32, i32) {
    %c0_i32 = arith.constant 0 : i32
    %c0_i32_0 = arith.constant 0 : i32
    %c0_i32_1 = arith.constant 0 : i32
    return %c0_i32, %c0_i32_0 : i32, i32
  }
  func.func @transform_5(%arg0: i32) -> (i32, i32) {
    %c0_i32 = arith.constant 0 : i32
    %c0_i32_0 = arith.constant 0 : i32
    return %arg0, %c0_i32 : i32, i32
  }
}

</mosaic_0001>

<bundles_post_ra>
// kernel: tpu_custom_call.1
= control target key start
LH: loop header
LB: loop body
LE: loop exit
PB: predicated region body
PF: predicated region fallthrough
CT: control target
= control target key end

     0   :  { %10 = vsyncpa [#allocation3], 0  ;;  %s654_s0 = inlined_call_operand.hbm [shape: bf16[16,128], index: 0, kind: input, shape index: {}]   ;;  %s655_s1 = inlined_call_operand.hbm [shape: bf16[128,128], index: 1, kind: input, shape index: {}]   ;;  %s656_s2 = inlined_call_operand.vmem [shape: f32[1,128], index: 2, kind: input, shape index: {}]   ;;  %s657_s3 = inlined_call_operand.hbm [shape: bf16[128,128], index: 3, kind: input, shape index: {}]   ;;  %s658_s4 = inlined_call_operand.vmem [shape: f32[1,128], index: 4, kind: input, shape index: {}]   ;;  %s659_s5 = inlined_call_operand.hbm [shape: f32[16,128], index: 5, kind: output, shape index: {}]  }
   0x1   :  { %11 = vsyncpa [#allocation6], 0 }
   0x2   :  { %12 = vsyncpa [#allocation4], 0  ;;  %s544_s18 = smov [#allocation5]   ;;  %s545_s20 = smov [#allocation2]  }
   0x3   :  { %s30_s19 = sshll.u32 %s544_s18, 4  ;;  %s18_s21 = sshll.u32 %s545_s20, 4  ;;  %s31_s19 = int_to_ptr.vmem [resolvable:$true] %s30_s19  ;;  %s584_s21 = int_to_ptr.vmem [resolvable:$true] %s18_s21 }
   0x4   :  { %s450_s24 = scalar_lea.hbm %s655_s1, 1024 }
   0x5   :  { %p451_p0 = scmp.ne.s32.totalorder %s655_s1, %s450_s24  ;;  %p454_p1 = scmp.lt.u32.totalorder %s450_s24, %s655_s1 }
   0x7   :  { %p456_p2 = pnand %p454_p1, %p451_p0 }
   0x9   :  { %459 = shalt.err (!%p456_p2)
}
   0xa   :  { %s460_s29 = scalar_lea.vmem %s31_s19, 1024  ;;  %p465_p4 = scmp.lt.s32.totalorder %s31_s19, %s31_s19 }
   0xb   :  { %p461_p3 = scmp.ne.s32.totalorder %s31_s19, %s460_s29  ;;  %p466_p5 = scmp.lt.s32.totalorder %s460_s29, %s460_s29 }
   0xd   :  { %p467_p6 = por %p466_p5, %p465_p4 }
   0xf   :  { %p468_p7 = pnand %p467_p6, %p461_p3 }
  0x11   :  { %471 = shalt.err (!%p468_p7)
}
  0x12   :  { %s546_s30 = smov 64   ;;  %s547_s6 = smov 4  }
  0x13   :  { %36 = dma.hbm_to_vmem [thread:$0]  %s655_s1, 1024, %s31_s19, [#allocation6], %s546_s30, %s546_s30, %s547_s6  }
  0x14   :  { %s472_s11 = scalar_lea.hbm %s654_s0, 128 }
  0x15   :  { %p473_p8 = scmp.ne.s32.totalorder %s654_s0, %s472_s11  ;;  %p476_p9 = scmp.lt.u32.totalorder %s472_s11, %s654_s0 }
  0x17   :  { %p478_p10 = pnand %p476_p9, %p473_p8 }
  0x19   :  { %481 = shalt.err (!%p478_p10)
}
  0x1a   :  { %s482_s16 = scalar_lea.vmem %s584_s21, 128  ;;  %p487_p12 = scmp.lt.s32.totalorder %s584_s21, %s584_s21 }
  0x1b   :  { %p483_p11 = scmp.ne.s32.totalorder %s584_s21, %s482_s16  ;;  %p488_p13 = scmp.lt.s32.totalorder %s482_s16, %s482_s16 }
  0x1d   :  { %p489_p0 = por %p488_p13, %p487_p12 }
  0x1f   :  { %p490_p1 = pnand %p489_p0, %p483_p11 }
  0x21   :  { %493 = shalt.err (!%p490_p1)
}
  0x22   :  { %24 = dma.hbm_to_vmem [thread:$0]  %s654_s0, 128, %s584_s21, [#allocation3], %s546_s30, %s546_s30, %s547_s6  }
  0x23   :  { %s548_s18 = smov [#allocation7]   ;;  %s494_s23 = scalar_lea.hbm %s657_s3, 1024 }
  0x24   :  { %s44_s19 = sshll.u32 %s548_s18, 4  ;;  %p495_p2 = scmp.ne.s32.totalorder %s657_s3, %s494_s23  ;;  %s45_s19 = int_to_ptr.vmem [resolvable:$true] %s44_s19 }
  0x25   :  { %p498_p3 = scmp.lt.u32.totalorder %s494_s23, %s657_s3 }
  0x27   :  { %p500_p4 = pnand %p498_p3, %p495_p2 }
  0x29   :  { %503 = shalt.err (!%p500_p4)
}
  0x2a   :  { %s504_s28 = scalar_lea.vmem %s45_s19, 1024  ;;  %p509_p6 = scmp.lt.s32.totalorder %s45_s19, %s45_s19 }
  0x2b   :  { %p505_p5 = scmp.ne.s32.totalorder %s45_s19, %s504_s28  ;;  %p510_p7 = scmp.lt.s32.totalorder %s504_s28, %s504_s28 }
  0x2d   :  { %p511_p8 = por %p510_p7, %p509_p6 }
  0x2f   :  { %p512_p9 = pnand %p511_p8, %p505_p5 }
  0x31   :  { %515 = shalt.err (!%p512_p9)
}
  0x32   :  { %50 = dma.hbm_to_vmem [thread:$0]  %s657_s3, 1024, %s45_s19, [#allocation6], %s546_s30, %s546_s30, %s547_s6  }
  0x33   :  { %538 = dma.done.wait [#allocation3], 128  }
  0x34   :  { %539 = vsyncadd [#allocation3], 4294967168 }
  0x35   :  { %540 = dma.done.wait [#allocation6], 2048  }
  0x36   :  { %541 = vsyncadd [#allocation6], 4294965248  ;;  %v549_v0 = vmov 0.0   ;;  %vm550_vm0 = vmmov 0   ;;  %v425_v1 = vld [vmem:[#allocation5] sm:$0xff]   ;;  %v426_v2 = vld [vmem:[#allocation5 + $0x8] sm:$0xff]  }
  0x37   :  { %375 = vmatprep.subr.bf16.mxu0 %v549_v0  ;;  %391 = vmatprep.mubr.msk.bf16.mxu0 %vm550_vm0, %v549_v0  ;;  %v427_v3 = vld [vmem:[#allocation5 + $0x10] sm:$0xff]   ;;  %v428_v4 = vld [vmem:[#allocation5 + $0x18] sm:$0xff]   ;;  %v429_v5 = vld [vmem:[#allocation5 + $0x20] sm:$0xff]   ;;  %s551_s6 = smov [#allocation8]  }
  0x38   :  { %395 = vmatprep.subr.bf16.mxu1 %v549_v0  ;;  %411 = vmatprep.mubr.msk.bf16.mxu1 %vm550_vm0, %v549_v0  ;;  %v430_v6 = vld [vmem:[#allocation5 + $0x28] sm:$0xff]   ;;  %v431_v7 = vld [vmem:[#allocation5 + $0x30] sm:$0xff]   ;;  %v432_v8 = vld [vmem:[#allocation5 + $0x38] sm:$0xff]   ;;  %s325_s7 = sshll.u32 %s551_s6, 4  ;;  %s326_s7 = int_to_ptr.vmem [resolvable:$true] %s325_s7 }
  0x39   :  { %376 = vmatpush3.bf16.msra.mxu0 %v425_v1  ;;  %v433_v9 = vld [vmem:[#allocation2] sm:$0xff]   ;;  %v434_v10 = vld [vmem:[#allocation7] sm:$0xff]   ;;  %v435_v11 = vld [vmem:[#allocation7 + $0x8] sm:$0xff]   ;;  %s516_s8 = scalar_lea.vmem %s326_s7, 256  ;;  %p521_p11 = scmp.lt.s32.totalorder %s326_s7, %s326_s7 }
  0x3a   :  { %377 = vmatprep.subr.bf16.mxu0 %v549_v0  ;;  %396 = vmatpush3.bf16.msra.mxu1 %v434_v10  ;;  %v436_v12 = vld [vmem:[#allocation7 + $0x10] sm:$0xff]   ;;  %v437_v13 = vld [vmem:[#allocation7 + $0x18] sm:$0xff]   ;;  %v438_v14 = vld [vmem:[#allocation7 + $0x20] sm:$0xff]   ;;  %p517_p10 = scmp.ne.s32.totalorder %s326_s7, %s516_s8  ;;  %p522_p12 = scmp.lt.s32.totalorder %s516_s8, %s516_s8 }
  0x3b   :  { %397 = vmatprep.subr.bf16.mxu1 %v549_v0  ;;  %v439_v15 = vld [vmem:[#allocation7 + $0x28] sm:$0xff]   ;;  %v440_v16 = vld [vmem:[#allocation7 + $0x30] sm:$0xff]   ;;  %v441_v17 = vld [vmem:[#allocation7 + $0x38] sm:$0xff]  }
  0x3c   :  { %v338_v18 = vld [vmem:[%s656_s2] ss:$0 sm:$0xff]  ;;  %p523_p13 = por %p522_p12, %p521_p11 }
  0x3d   :  { %378 = vmatpush3.bf16.msra.mxu0 %v426_v2  ;;  %v348_v46 = vld [vmem:[%s658_s4] ss:$0 sm:$0xff] }
  0x3e   :  { %379 = vmatprep.subr.bf16.mxu0 %v549_v0  ;;  %398 = vmatpush3.bf16.msra.mxu1 %v435_v11  ;;  %p524_p0 = pnand %p523_p13, %p517_p10 }
  0x3f   :  { %399 = vmatprep.subr.bf16.mxu1 %v549_v0 }
  0x41   :  { %380 = vmatpush3.bf16.msra.mxu0 %v427_v3 }
  0x42   :  { %381 = vmatprep.subr.bf16.mxu0 %v549_v0  ;;  %400 = vmatpush3.bf16.msra.mxu1 %v436_v12 }
  0x43   :  { %401 = vmatprep.subr.bf16.mxu1 %v549_v0 }
  0x45   :  { %382 = vmatpush3.bf16.msra.mxu0 %v428_v4 }
  0x46   :  { %383 = vmatprep.subr.bf16.mxu0 %v549_v0  ;;  %402 = vmatpush3.bf16.msra.mxu1 %v437_v13 }
  0x47   :  { %403 = vmatprep.subr.bf16.mxu1 %v549_v0 }
  0x49   :  { %384 = vmatpush3.bf16.msra.mxu0 %v429_v5 }
  0x4a   :  { %385 = vmatprep.subr.bf16.mxu0 %v549_v0  ;;  %404 = vmatpush3.bf16.msra.mxu1 %v438_v14 }
  0x4b   :  { %405 = vmatprep.subr.bf16.mxu1 %v549_v0 }
  0x4d   :  { %386 = vmatpush3.bf16.msra.mxu0 %v430_v6 }
  0x4e   :  { %387 = vmatprep.subr.bf16.mxu0 %v549_v0  ;;  %406 = vmatpush3.bf16.msra.mxu1 %v439_v15 }
  0x4f   :  { %407 = vmatprep.subr.bf16.mxu1 %v549_v0 }
  0x51   :  { %388 = vmatpush3.bf16.msra.mxu0 %v431_v7 }
  0x52   :  { %389 = vmatprep.subr.bf16.mxu0 %v549_v0  ;;  %408 = vmatpush3.bf16.msra.mxu1 %v440_v16 }
  0x53   :  { %409 = vmatprep.subr.bf16.mxu1 %v549_v0 }
  0x55   :  { %390 = vmatpush3.bf16.msra.mxu0 %v432_v8 }
  0x56   :  { %410 = vmatpush3.bf16.msra.mxu1 %v441_v17 }
  0x58   :  { %392 = vmatmul.mubr.bf16.vlgmr.msra.gmra.mrb[0].mxu0 %v433_v9 }
 0x12b   :  { %v176_v19 = vpop.f32.mrb[0].mxu0 }
 0x12c   :  { %v177_v20 = vadd.f32 %v338_v18, %v176_v19  ;;  %v393_v21 = vpop.f32.mrb[1].mxu0 }
 0x12d   :  { %v179_v22 = vpop.f32.mrb[2].mxu0 }
 0x12e   :  { %v183_v23 = vmin.f32 %v177_v20, 20.0  ;;  %v180_v24 = vadd.f32 %v338_v18, %v179_v22  ;;  %v394_v25 = vpop.f32.mrb[3].mxu0  ;;  %vm193_vm1 = vcmp.gt.f32.partialorder %v177_v20, 20.0 }
 0x130   :  { %v185_v26 = vmul.f32 1.442695, %v183_v23  ;;  %v184_v27 = vmin.f32 %v180_v24, 20.0  ;;  %vm194_vm2 = vcmp.gt.f32.partialorder %v180_v24, 20.0 }
 0x132   :  { %442 = vpow2.f32 %v185_v26  ;;  %v187_v28 = vmul.f32 1.442695, %v184_v27 }
 0x134   :  { %444 = vpow2.f32 %v187_v28 }
 0x13c   :  { %v443_v29 = vpop.eup %442 }
 0x13d   :  { %v189_v30 = vadd.f32 2.0, %v443_v29 }
 0x13e   :  { %v445_v31 = vpop.eup %444 }
 0x13f   :  { %v191_v32 = vmul.f32 %v443_v29, %v189_v30  ;;  %v190_v33 = vadd.f32 2.0, %v445_v31 }
 0x141   :  { %v197_v34 = vadd.f32 2.0, %v191_v32  ;;  %v192_v35 = vmul.f32 %v445_v31, %v190_v33  ;;  %v195_v37 = vmul.f32 %v191_v32, %v177_v20 }
 0x143   :  { %446 = vrcp.f32 %v197_v34  ;;  %v198_v36 = vadd.f32 2.0, %v192_v35  ;;  %v196_v39 = vmul.f32 %v192_v35, %v180_v24 }
 0x145   :  { %448 = vrcp.f32 %v198_v36 }
 0x14d   :  { %v447_v38 = vpop.eup %446 }
 0x14e   :  { %v201_v40 = vmul.f32 %v447_v38, %v195_v37 }
 0x14f   :  { %v449_v41 = vpop.eup %448 }
 0x150   :  { %v202_v42 = vmul.f32 %v449_v41, %v196_v39  ;;  %v203_v43 = vsel %vm193_vm1, %v177_v20, %v201_v40 }
 0x152   :  { %v204_v44 = vsel %vm194_vm2, %v180_v24, %v202_v42 }
 0x153   :  { %v205_v45 = vpack.c.bf16 %v204_v44, %v203_v43 }
 0x155   :  { %412 = vmatmul.mubr.bf16.vlgmr.msra.gmra.mrb[0].mxu1 %v205_v45 }
 0x228   :  { %v311_v47 = vpop.f32.mrb[0].mxu1 }
 0x229   :  { %v312_v48 = vadd.f32 %v348_v46, %v311_v47  ;;  %v413_v49 = vpop.f32.mrb[1].mxu1 }
 0x22a   :  { %v314_v50 = vpop.f32.mrb[2].mxu1 }
 0x22b   :  { %318 = vst [vmem:[#allocation8] sm:$0xff] %v312_v48  ;;  %v315_v51 = vadd.f32 %v348_v46, %v314_v50  ;;  %v414_v52 = vpop.f32.mrb[3].mxu1 }
 0x22d   :  { %319 = vst [vmem:[#allocation8 + $0x8] sm:$0xff] %v315_v51 }
 0x22e   :  { %527 = shalt.err (!%p524_p0)
}
 0x22f   :  { %s528_s10 = scalar_lea.hbm %s659_s5, 256 }
 0x230   :  { %p529_p1 = scmp.ne.s32.totalorder %s659_s5, %s528_s10  ;;  %p532_p2 = scmp.lt.u32.totalorder %s528_s10, %s659_s5 }
 0x232   :  { %p534_p3 = pnand %p532_p2, %p529_p1 }
 0x234   :  { %537 = shalt.err (!%p534_p3)
}
 0x235   :  { %s552_s15 = smov 128   ;;  %s553_s16 = smov 8  }
 0x236   :  { %331 = dma.vmem_to_hbm [thread:$0]  %s326_s7, 256, %s659_s5, [#allocation4], %s552_s15, %s552_s15, %s553_s16  }
 0x237   :  { %542 = dma.done.wait [#allocation4], 256  }
 0x238   :  { %543 = vsyncadd [#allocation4], 4294967040 }
 0x239   :  { %335 = vsyncpa [#allocation3], 1 }
 0x23a   :  { %336 = vsyncpa [#allocation6], 1 }
 0x23b   :  { %337 = vsyncpa [#allocation4], 1 }

</bundles_post_ra>
